<compile_context>
chip_gen: v6e
topology: v6e:2x2x1
jax: 0.10.0
libtpu: 0.0.40
codegen_flags: <defaults>
</compile_context>

<pallas_src>
import jax
import jax.numpy as jnp
from jax.experimental import pallas as pl
from jax.experimental.pallas import tpu as pltpu


def quadmlp_kernel(x_ref, w0_ref, b0_ref, w1_ref, b1_ref, w2_ref, b2_ref,
                   sel_ref, o_ref):
    # Layer 0: Linear + ReLU.  bf16 MXU matmul, f32 accumulate / epilogue.
    xb = x_ref[...].astype(jnp.bfloat16)
    h = jnp.dot(xb, w0_ref[...], preferred_element_type=jnp.float32)
    h = jnp.maximum(h + b0_ref[...], 0.0)
    # Layer 1: Linear + ReLU.
    h = jnp.dot(h.astype(jnp.bfloat16), w1_ref[...],
                preferred_element_type=jnp.float32)
    h = jnp.maximum(h + b1_ref[...], 0.0)
    # Layer 2: Linear (no activation).
    m = jnp.dot(h.astype(jnp.bfloat16), w2_ref[...],
                preferred_element_type=jnp.float32)
    m = m + b2_ref[...]
    # Quadratic head: per-sample sum of squares.  sel[(j*N + c), j] = 1, so
    # column j of the result is sample j's sum over its N outputs.  f32 MXU
    # contraction keeps the squared values at full precision.
    msq = m * m
    o_ref[...] = jnp.dot(msq, sel_ref[...], preferred_element_type=jnp.float32)


def _round_up(a, m):
    return ((a + m - 1) // m) * m


def quadmlp_pallas(x, w0, b0, w1, b1, w2, b2, *, tile_b=16384):
    """QuadMLP forward.

    x: [B, K] float32.  Weights are stored as [in, out] (math identical to
    torch Linear); biases as [1, out].  Returns [B, 1] float32.
    """
    B, K = x.shape
    H = w0.shape[1]
    N = w2.shape[1]

    # Pack `p` samples per 128-lane row (p = 8 for K = 16).  Falls back to
    # p = 1 (plain, lane-padded layout) if K does not divide 128.
    p = 128 // K if (K <= 128 and 128 % K == 0) else 1
    Bp = _round_up(B, p)
    if Bp != B:                            # only copies when B % p != 0
        x = jnp.pad(x, ((0, Bp - B), (0, 0)))
    Br = Bp // p                           # rows of the packed view
    row_w = p * K
    xr = x.reshape(Br, row_w)              # free: contiguous row-major reshape

    # Block-diagonal weights / tiled biases / group-sum selector.  These are
    # tiny (<= p*H x p*H) and rebuilt per call; precompute them for real use.
    def bdiag(w):
        return jnp.kron(jnp.eye(p, dtype=w.dtype), w).astype(jnp.bfloat16)

    w0bd, w1bd, w2bd = bdiag(w0), bdiag(w1), bdiag(w2)
    b0t = jnp.tile(b0.reshape(1, -1).astype(jnp.float32), (1, p))
    b1t = jnp.tile(b1.reshape(1, -1).astype(jnp.float32), (1, p))
    b2t = jnp.tile(b2.reshape(1, -1).astype(jnp.float32), (1, p))
    sel = jnp.kron(jnp.eye(p, dtype=jnp.float32), jnp.ones((N, 1), jnp.float32))

    # Packed rows per tile: target `tile_b` samples, multiple of 8 sublanes,
    # and at least two grid steps when there is enough work (v7x megacore).
    tbr = _round_up(max(pl.cdiv(tile_b, p), 8), 8)
    tbr = min(tbr, _round_up(max(pl.cdiv(Br, 2), 8), 8))
    tbr = min(tbr, _round_up(Br, 8))
    grid = (pl.cdiv(Br, tbr),)             # last block may be partial

    # Constant index_map -> block stays VMEM-resident across grid steps.
    resident = lambda a: pl.BlockSpec(a.shape, lambda i: (0,) * a.ndim)

    flops = 2 * B * (K * H + H * H + H * N + N)
    bytes_accessed = (xr.size * xr.dtype.itemsize + Bp * 4
                      + sum(int(a.size) * a.dtype.itemsize
                            for a in (w0bd, w1bd, w2bd, b0t, b1t, b2t, sel)))

    out = pl.pallas_call(
        quadmlp_kernel,
        out_shape=jax.ShapeDtypeStruct((Br, p), jnp.float32),
        grid=grid,
        in_specs=[
            pl.BlockSpec((tbr, row_w), lambda i: (i, 0)),   # x tile, pipelined
            resident(w0bd), resident(b0t),
            resident(w1bd), resident(b1t),
            resident(w2bd), resident(b2t),
            resident(sel),
        ],
        out_specs=pl.BlockSpec((tbr, p), lambda i: (i, 0)),
        compiler_params=pltpu.CompilerParams(
            dimension_semantics=("parallel",),               # megacore on v7x
            vmem_limit_bytes=48 * 1024 * 1024,
        ),
        cost_estimate=pl.CostEstimate(
            flops=int(flops), transcendentals=0,
            bytes_accessed=int(bytes_accessed)),
    )(xr, w0bd, b0t, w1bd, b1t, w2bd, b2t, sel)

    # Row-major flatten of (Br, p) is exactly batch order; drop the pad tail.
    return out.reshape(Bp, 1)[:B]


def quadmlp_ref(x, w0, b0, w1, b1, w2, b2):
    h = jnp.maximum(x @ w0 + b0, 0.0)
    h = jnp.maximum(h @ w1 + b1, 0.0)
    m = h @ w2 + b2
    return jnp.sum(m * m, axis=-1, keepdims=True)


def init_linear(key, fan_in, fan_out):
    # Mimic torch.nn.Linear default init: U(-1/sqrt(fan_in), 1/sqrt(fan_in)).
    kw, kb = jax.random.split(key)
    bound = 1.0 / jnp.sqrt(fan_in)
    w = jax.random.uniform(kw, (fan_in, fan_out), jnp.float32, -bound, bound)
    b = jax.random.uniform(kb, (1, fan_out), jnp.float32, -bound, bound)
    return w, b


if __name__ == "__main__":
    input_size = 16
    hidden_size = 32
    mlp_output_size = 32

    key = jax.random.PRNGKey(0)
    kx, k0, k1, k2, kx2 = jax.random.split(key, 5)

    w0, b0 = init_linear(k0, input_size, hidden_size)
    w1, b1 = init_linear(k1, hidden_size, hidden_size)
    w2, b2 = init_linear(k2, hidden_size, mlp_output_size)

    # Small batch: single grid step, exact packed rows.
    x = jax.random.normal(kx, (64, input_size), jnp.float32)
    out = jax.block_until_ready(quadmlp_pallas(x, w0, b0, w1, b1, w2, b2))
    ref = quadmlp_ref(x, w0, b0, w1, b1, w2, b2)
    assert out.shape == (64, 1)
    # bf16 matmul operands -> loosened tolerance (quadratic head amplifies it).
    assert jnp.allclose(out, ref, rtol=5e-2, atol=1e-2)

    # Multi-tile + ragged batch: exercises the cdiv grid, a partial last
    # block, the pack-padding path (1003 % 8 != 0) and the parallel axis.
    x2 = jax.random.normal(kx2, (1003, input_size), jnp.float32)
    out2 = jax.block_until_ready(
        quadmlp_pallas(x2, w0, b0, w1, b1, w2, b2, tile_b=256))
    ref2 = quadmlp_ref(x2, w0, b0, w1, b1, w2, b2)
    assert out2.shape == (1003, 1)
    assert jnp.allclose(out2, ref2, rtol=5e-2, atol=1e-2)

    print("KERNEL_OK")
</pallas_src>

<mosaic_0001>
module attributes {stable_mosaic.version = 11 : i64} {
  func.func @quadmlp_kernel(%arg0: i32, %arg1: memref<8x128xf32, #tpu.memory_space<vmem>>, %arg2: memref<128x256xbf16, #tpu.memory_space<vmem>>, %arg3: memref<1x256xf32, #tpu.memory_space<vmem>>, %arg4: memref<256x256xbf16, #tpu.memory_space<vmem>>, %arg5: memref<1x256xf32, #tpu.memory_space<vmem>>, %arg6: memref<256x256xbf16, #tpu.memory_space<vmem>>, %arg7: memref<1x256xf32, #tpu.memory_space<vmem>>, %arg8: memref<256x8xf32, #tpu.memory_space<vmem>>, %arg9: memref<8x8xf32, #tpu.memory_space<vmem>>) attributes {dimension_semantics = [#tpu.dimension_semantics<parallel>], iteration_bounds = array<i64: 1>, scalar_prefetch = 0 : i64, scratch_operands = 0 : i64, tpu.core_type = #tpu.core_type<tc>, window_params = [{transform_indices = @transform_0, window_bounds = array<i64: 8, 128>}, {pipeline_mode = #tpu.pipeline_mode<synchronous>, transform_indices = @transform_1, window_bounds = array<i64: 128, 256>}, {pipeline_mode = #tpu.pipeline_mode<synchronous>, transform_indices = @transform_2, window_bounds = array<i64: 1, 256>}, {pipeline_mode = #tpu.pipeline_mode<synchronous>, transform_indices = @transform_3, window_bounds = array<i64: 256, 256>}, {pipeline_mode = #tpu.pipeline_mode<synchronous>, transform_indices = @transform_4, window_bounds = array<i64: 1, 256>}, {pipeline_mode = #tpu.pipeline_mode<synchronous>, transform_indices = @transform_5, window_bounds = array<i64: 256, 256>}, {pipeline_mode = #tpu.pipeline_mode<synchronous>, transform_indices = @transform_6, window_bounds = array<i64: 1, 256>}, {pipeline_mode = #tpu.pipeline_mode<synchronous>, transform_indices = @transform_7, window_bounds = array<i64: 256, 8>}, {transform_indices = @transform_8, window_bounds = array<i64: 8, 8>}]} {
    %c0 = arith.constant 0 : index
    %c0_0 = arith.constant 0 : index
    %0 = vector.load %arg1[%c0, %c0_0] : memref<8x128xf32, #tpu.memory_space<vmem>>, vector<8x128xf32>
    %1 = arith.truncf %0 : vector<8x128xf32> to vector<8x128xbf16>
    %c0_1 = arith.constant 0 : index
    %c0_2 = arith.constant 0 : index
    %2 = vector.load %arg2[%c0_1, %c0_2] : memref<128x256xbf16, #tpu.memory_space<vmem>>, vector<128x256xbf16>
    %cst = arith.constant dense<0.000000e+00> : vector<8x256xf32>
    %3 = tpu.matmul %1, %2, %cst {dimension_numbers = #tpu.dot_dimension_numbers<[1], [0], [0], [1], [0, 0, 1, 1], [], []>} : vector<8x128xbf16>, vector<128x256xbf16>, vector<8x256xf32> -> vector<8x256xf32>
    %c0_3 = arith.constant 0 : index
    %c0_4 = arith.constant 0 : index
    %4 = vector.load %arg3[%c0_3, %c0_4] : memref<1x256xf32, #tpu.memory_space<vmem>>, vector<1x256xf32>
    %5 = vector.broadcast %4 : vector<1x256xf32> to vector<8x256xf32>
    %6 = arith.addf %3, %5 : vector<8x256xf32>
    %cst_5 = arith.constant 0.000000e+00 : f32
    %7 = vector.broadcast %cst_5 : f32 to vector<8x256xf32>
    %8 = arith.maximumf %6, %7 : vector<8x256xf32>
    %9 = arith.truncf %8 : vector<8x256xf32> to vector<8x256xbf16>
    %c0_6 = arith.constant 0 : index
    %c0_7 = arith.constant 0 : index
    %10 = vector.load %arg4[%c0_6, %c0_7] : memref<256x256xbf16, #tpu.memory_space<vmem>>, vector<256x256xbf16>
    %cst_8 = arith.constant dense<0.000000e+00> : vector<8x256xf32>
    %11 = tpu.matmul %9, %10, %cst_8 {dimension_numbers = #tpu.dot_dimension_numbers<[1], [0], [0], [1], [0, 0, 1, 1], [], []>} : vector<8x256xbf16>, vector<256x256xbf16>, vector<8x256xf32> -> vector<8x256xf32>
    %c0_9 = arith.constant 0 : index
    %c0_10 = arith.constant 0 : index
    %12 = vector.load %arg5[%c0_9, %c0_10] : memref<1x256xf32, #tpu.memory_space<vmem>>, vector<1x256xf32>
    %13 = vector.broadcast %12 : vector<1x256xf32> to vector<8x256xf32>
    %14 = arith.addf %11, %13 : vector<8x256xf32>
    %cst_11 = arith.constant 0.000000e+00 : f32
    %15 = vector.broadcast %cst_11 : f32 to vector<8x256xf32>
    %16 = arith.maximumf %14, %15 : vector<8x256xf32>
    %17 = arith.truncf %16 : vector<8x256xf32> to vector<8x256xbf16>
    %c0_12 = arith.constant 0 : index
    %c0_13 = arith.constant 0 : index
    %18 = vector.load %arg6[%c0_12, %c0_13] : memref<256x256xbf16, #tpu.memory_space<vmem>>, vector<256x256xbf16>
    %cst_14 = arith.constant dense<0.000000e+00> : vector<8x256xf32>
    %19 = tpu.matmul %17, %18, %cst_14 {dimension_numbers = #tpu.dot_dimension_numbers<[1], [0], [0], [1], [0, 0, 1, 1], [], []>} : vector<8x256xbf16>, vector<256x256xbf16>, vector<8x256xf32> -> vector<8x256xf32>
    %c0_15 = arith.constant 0 : index
    %c0_16 = arith.constant 0 : index
    %20 = vector.load %arg7[%c0_15, %c0_16] : memref<1x256xf32, #tpu.memory_space<vmem>>, vector<1x256xf32>
    %21 = vector.broadcast %20 : vector<1x256xf32> to vector<8x256xf32>
    %22 = arith.addf %19, %21 : vector<8x256xf32>
    %23 = arith.mulf %22, %22 : vector<8x256xf32>
    %c0_17 = arith.constant 0 : index
    %c0_18 = arith.constant 0 : index
    %24 = vector.load %arg8[%c0_17, %c0_18] : memref<256x8xf32, #tpu.memory_space<vmem>>, vector<256x8xf32>
    %cst_19 = arith.constant dense<0.000000e+00> : vector<8x8xf32>
    %25 = tpu.matmul %23, %24, %cst_19 {dimension_numbers = #tpu.dot_dimension_numbers<[1], [0], [0], [1], [0, 0, 1, 1], [], []>} : vector<8x256xf32>, vector<256x8xf32>, vector<8x8xf32> -> vector<8x8xf32>
    %c0_20 = arith.constant 0 : index
    %c0_21 = arith.constant 0 : index
    %26 = vector.load %arg9[%c0_20, %c0_21] : memref<8x8xf32, #tpu.memory_space<vmem>>, vector<8x8xf32>
    tpu.vector_store %arg9[%c0_20, %c0_21], %25 {strides = array<i32>} : memref<8x8xf32, #tpu.memory_space<vmem>>, vector<8x8xf32>,
    return
  }
  func.func @transform_0(%arg0: i32) -> (i32, i32) {
    %c0_i32 = arith.constant 0 : i32
    %c0_i32_0 = arith.constant 0 : i32
    return %arg0, %c0_i32 : i32, i32
  }
  func.func @transform_1(%arg0: i32) -> (i32, i32) {
    %c0_i32 = arith.constant 0 : i32
    %c0_i32_0 = arith.constant 0 : i32
    %c0_i32_1 = arith.constant 0 : i32
    return %c0_i32, %c0_i32_0 : i32, i32
  }
  func.func @transform_2(%arg0: i32) -> (i32, i32) {
    %c0_i32 = arith.constant 0 : i32
    %c0_i32_0 = arith.constant 0 : i32
    %c0_i32_1 = arith.constant 0 : i32
    return %c0_i32, %c0_i32_0 : i32, i32
  }
  func.func @transform_3(%arg0: i32) -> (i32, i32) {
    %c0_i32 = arith.constant 0 : i32
    %c0_i32_0 = arith.constant 0 : i32
    %c0_i32_1 = arith.constant 0 : i32
    return %c0_i32, %c0_i32_0 : i32, i32
  }
  func.func @transform_4(%arg0: i32) -> (i32, i32) {
    %c0_i32 = arith.constant 0 : i32
    %c0_i32_0 = arith.constant 0 : i32
    %c0_i32_1 = arith.constant 0 : i32
    return %c0_i32, %c0_i32_0 : i32, i32
  }
  func.func @transform_5(%arg0: i32) -> (i32, i32) {
    %c0_i32 = arith.constant 0 : i32
    %c0_i32_0 = arith.constant 0 : i32
    %c0_i32_1 = arith.constant 0 : i32
    return %c0_i32, %c0_i32_0 : i32, i32
  }
  func.func @transform_6(%arg0: i32) -> (i32, i32) {
    %c0_i32 = arith.constant 0 : i32
    %c0_i32_0 = arith.constant 0 : i32
    %c0_i32_1 = arith.constant 0 : i32
    return %c0_i32, %c0_i32_0 : i32, i32
  }
  func.func @transform_7(%arg0: i32) -> (i32, i32) {
    %c0_i32 = arith.constant 0 : i32
    %c0_i32_0 = arith.constant 0 : i32
    %c0_i32_1 = arith.constant 0 : i32
    return %c0_i32, %c0_i32_0 : i32, i32
  }
  func.func @transform_8(%arg0: i32) -> (i32, i32) {
    %c0_i32 = arith.constant 0 : i32
    %c0_i32_0 = arith.constant 0 : i32
    return %arg0, %c0_i32 : i32, i32
  }
}

</mosaic_0001>

<bundles_post_ra>
// kernel: tpu_custom_call.1
= control target key start
LH: loop header
LB: loop body
LE: loop exit
PB: predicated region body
PF: predicated region fallthrough
CT: control target
= control target key end

     0   :  { %13 = vsyncpa [#allocation3], 0  ;;  %s1411_s0 = inlined_call_operand.vmem [shape: f32[8,128], index: 0, kind: input, shape index: {}]   ;;  %s1412_s1 = inlined_call_operand.hbm [shape: bf16[128,256], index: 1, kind: input, shape index: {}]   ;;  %s1413_s2 = inlined_call_operand.vmem [shape: f32[1,256], index: 2, kind: input, shape index: {}]   ;;  %s1414_s3 = inlined_call_operand.vmem [shape: bf16[256,256], index: 3, kind: input, shape index: {}]   ;;  %s1415_s4 = inlined_call_operand.vmem [shape: f32[1,256], index: 4, kind: input, shape index: {}]   ;;  %s1416_s5 = inlined_call_operand.hbm [shape: bf16[256,256], index: 5, kind: input, shape index: {}]   ;;  %s1417_s6 = inlined_call_operand.vmem [shape: f32[1,256], index: 6, kind: input, shape index: {}]   ;;  %s1418_s7 = inlined_call_operand.vmem [shape: f32[256,8], index: 7, kind: input, shape index: {}]   ;;  %s1419_s8 = inlined_call_operand.hbm [shape: f32[8,8], index: 8, kind: output, shape index: {}]  }
   0x1   :  { %14 = vsyncpa [#allocation6], 0 }
   0x2   :  { %15 = vsyncpa [#allocation4], 0  ;;  %s1137_s27 = smov [#allocation2]  }
   0x3   :  { %s23_s28 = sshll.u32 %s1137_s27, 4  ;;  %s24_s28 = int_to_ptr.vmem [resolvable:$true] %s23_s28 }
   0x4   :  { %s1079_s29 = scalar_lea.vmem %s24_s28, 2048  ;;  %p1084_p1 = scmp.lt.s32.totalorder %s24_s28, %s24_s28 }
   0x5   :  { %p1080_p0 = scmp.ne.s32.totalorder %s24_s28, %s1079_s29  ;;  %p1085_p2 = scmp.lt.s32.totalorder %s1079_s29, %s1079_s29 }
   0x7   :  { %p1086_p3 = por %p1085_p2, %p1084_p1 }
   0x9   :  { %p1087_p4 = pnand %p1086_p3, %p1080_p0 }
   0xb   :  { %1090 = shalt.err (!%p1087_p4)
}
   0xc   :  { %s1138_s30 = smov 128   ;;  %s1139_s9 = smov 8  }
   0xd   :  { %29 = dma.hbm_to_vmem [thread:$0]  %s1412_s1, 2048, %s24_s28, [#allocation3], %s1138_s30, %s1138_s30, %s1139_s9  }
   0xe   :  { %s1140_s12 = smov [#allocation5]  }
   0xf   :  { %s41_s13 = sshll.u32 %s1140_s12, 4  ;;  %s42_s13 = int_to_ptr.vmem [resolvable:$true] %s41_s13 }
  0x10   :  { %s1099_s14 = scalar_lea.vmem %s42_s13, 4096  ;;  %p1104_p6 = scmp.lt.s32.totalorder %s42_s13, %s42_s13 }
  0x11   :  { %p1100_p5 = scmp.ne.s32.totalorder %s42_s13, %s1099_s14  ;;  %p1105_p7 = scmp.lt.s32.totalorder %s1099_s14, %s1099_s14 }
  0x13   :  { %p1106_p8 = por %p1105_p7, %p1104_p6 }
  0x15   :  { %p1107_p9 = pnand %p1106_p8, %p1100_p5 }
  0x17   :  { %1110 = shalt.err (!%p1107_p9)
}
  0x18   :  { %47 = dma.hbm_to_vmem [thread:$0]  %s1416_s5, 4096, %s42_s13, [#allocation6], %s1138_s30, %s1138_s30, %s1139_s9  }
  0x19   :  { %1131 = dma.done.wait [#allocation3], 2048  }
  0x1a   :  { %1132 = vsyncadd [#allocation3], 4294965248 }
  0x1b   :  { %1133 = dma.done.wait [#allocation6], 4096  }
  0x1c   :  { %1134 = vsyncadd [#allocation6], 4294963200  ;;  %v1141_v0 = vmov 0   ;;  %v951_v1 = vld [vmem:[#allocation2 + $0x74] ss:$8 sps:$4 sm:$0xff]   ;;  %v59_v26 = vld [vmem:[%s1411_s0] sm:$0xff] }
  0x1d   :  { %201 = vmatprep.mubr.bf16.mxu0 %v1141_v0  ;;  %v953_v2 = vld [vmem:[#allocation2 + $0x70] ss:$8 sps:$4 sm:$0xff]   ;;  %169 = vmatprep.subr.bf16.mxu0 %v951_v1  ;;  %v954_v3 = vld [vmem:[#allocation2 + $0x64] ss:$8 sps:$4 sm:$0xff]   ;;  %v956_v4 = vld [vmem:[#allocation2 + $0x60] ss:$8 sps:$4 sm:$0xff]   ;;  %v60_v31 = vpack.c.bf16 %v59_v26, %v59_v26 }
  0x1e   :  { %170 = vmatpush1.bf16.msra.mxu0 %v953_v2  ;;  %v957_v5 = vld [vmem:[#allocation2 + $0x54] ss:$8 sps:$4 sm:$0xff]   ;;  %v959_v6 = vld [vmem:[#allocation2 + $0x50] ss:$8 sps:$4 sm:$0xff]   ;;  %v960_v7 = vld [vmem:[#allocation2 + $0x44] ss:$8 sps:$4 sm:$0xff]  }
  0x1f   :  { %171 = vmatprep.subr.bf16.mxu0 %v954_v3  ;;  %v962_v8 = vld [vmem:[#allocation2 + $0x40] ss:$8 sps:$4 sm:$0xff]   ;;  %v963_v9 = vld [vmem:[#allocation2 + $0x34] ss:$8 sps:$4 sm:$0xff]   ;;  %v977_v11 = vld [vmem:[%s1414_s3 + $0x70] ss:$8 sps:$4 sm:$0xff]  }
  0x20   :  { %v975_v10 = vld [vmem:[%s1414_s3 + $0x74] ss:$8 sps:$4 sm:$0xff]   ;;  %v978_v12 = vld [vmem:[%s1414_s3 + $0x64] ss:$8 sps:$4 sm:$0xff]   ;;  %v965_v13 = vld [vmem:[#allocation2 + $0x30] ss:$8 sps:$4 sm:$0xff]  }
  0x21   :  { %418 = vmatprep.subr.bf16.mxu1 %v975_v10  ;;  %v980_v14 = vld [vmem:[%s1414_s3 + $0x60] ss:$8 sps:$4 sm:$0xff]   ;;  %v981_v15 = vld [vmem:[%s1414_s3 + $0x54] ss:$8 sps:$4 sm:$0xff]   ;;  %v966_v16 = vld [vmem:[#allocation2 + $0x24] ss:$8 sps:$4 sm:$0xff]  }
  0x22   :  { %172 = vmatpush1.bf16.msra.mxu0 %v956_v4  ;;  %419 = vmatpush1.bf16.msra.mxu1 %v977_v11  ;;  %v968_v17 = vld [vmem:[#allocation2 + $0x20] ss:$8 sps:$4 sm:$0xff]   ;;  %v983_v18 = vld [vmem:[%s1414_s3 + $0x50] ss:$8 sps:$4 sm:$0xff]   ;;  %v984_v19 = vld [vmem:[%s1414_s3 + $0x44] ss:$8 sps:$4 sm:$0xff]  }
  0x23   :  { %173 = vmatprep.subr.bf16.mxu0 %v957_v5  ;;  %420 = vmatprep.subr.bf16.mxu1 %v978_v12  ;;  %v969_v20 = vld [vmem:[#allocation2 + $0x14] ss:$8 sps:$4 sm:$0xff]   ;;  %v971_v21 = vld [vmem:[#allocation2 + $0x10] ss:$8 sps:$4 sm:$0xff]   ;;  %v986_v22 = vld [vmem:[%s1414_s3 + $0x40] ss:$8 sps:$4 sm:$0xff]  }
  0x24   :  { %v987_v23 = vld [vmem:[%s1414_s3 + $0x34] ss:$8 sps:$4 sm:$0xff]   ;;  %v972_v24 = vld [vmem:[#allocation2 + $0x4] ss:$8 sps:$4 sm:$0xff]   ;;  %v974_v25 = vld [vmem:[#allocation2] ss:$8 sps:$4 sm:$0xff]  }
  0x25   :  { %v989_v27 = vld [vmem:[%s1414_s3 + $0x30] ss:$8 sps:$4 sm:$0xff]   ;;  %v990_v28 = vld [vmem:[%s1414_s3 + $0x24] ss:$8 sps:$4 sm:$0xff]   ;;  %v992_v29 = vld [vmem:[%s1414_s3 + $0x20] ss:$8 sps:$4 sm:$0xff]  }
  0x26   :  { %174 = vmatpush1.bf16.msra.mxu0 %v959_v6  ;;  %421 = vmatpush1.bf16.msra.mxu1 %v980_v14  ;;  %v993_v30 = vld [vmem:[%s1414_s3 + $0x14] ss:$8 sps:$4 sm:$0xff]   ;;  %v995_v32 = vld [vmem:[%s1414_s3 + $0x10] ss:$8 sps:$4 sm:$0xff]   ;;  %v996_v33 = vld [vmem:[%s1414_s3 + $0x4] ss:$8 sps:$4 sm:$0xff]  }
  0x27   :  { %175 = vmatprep.subr.bf16.mxu0 %v960_v7  ;;  %422 = vmatprep.subr.bf16.mxu1 %v981_v15  ;;  %v998_v34 = vld [vmem:[%s1414_s3] ss:$8 sps:$4 sm:$0xff]   ;;  %v999_v35 = vld [vmem:[%s1414_s3 + $0xf4] ss:$8 sps:$4 sm:$0xff]   ;;  %v1001_v36 = vld [vmem:[%s1414_s3 + $0xf0] ss:$8 sps:$4 sm:$0xff]   ;;  %v79_v15 = vlaneseq }
  0x28   :  { %v1002_v37 = vld [vmem:[%s1414_s3 + $0xe4] ss:$8 sps:$4 sm:$0xff]   ;;  %v1004_v38 = vld [vmem:[%s1414_s3 + $0xe0] ss:$8 sps:$4 sm:$0xff]   ;;  %v1005_v39 = vld [vmem:[%s1414_s3 + $0xd4] ss:$8 sps:$4 sm:$0xff]  }
  0x29   :  { %v1007_v40 = vld [vmem:[%s1414_s3 + $0xd0] ss:$8 sps:$4 sm:$0xff]   ;;  %v1008_v41 = vld [vmem:[%s1414_s3 + $0xc4] ss:$8 sps:$4 sm:$0xff]   ;;  %v1010_v42 = vld [vmem:[%s1414_s3 + $0xc0] ss:$8 sps:$4 sm:$0xff]  }
  0x2a   :  { %176 = vmatpush1.bf16.msra.mxu0 %v962_v8  ;;  %423 = vmatpush1.bf16.msra.mxu1 %v983_v18  ;;  %v1011_v43 = vld [vmem:[%s1414_s3 + $0xb4] ss:$8 sps:$4 sm:$0xff]   ;;  %v1013_v44 = vld [vmem:[%s1414_s3 + $0xb0] ss:$8 sps:$4 sm:$0xff]   ;;  %v1014_v45 = vld [vmem:[%s1414_s3 + $0xa4] ss:$8 sps:$4 sm:$0xff]  }
  0x2b   :  { %177 = vmatprep.subr.bf16.mxu0 %v963_v9  ;;  %424 = vmatprep.subr.bf16.mxu1 %v984_v19  ;;  %v1016_v46 = vld [vmem:[%s1414_s3 + $0xa0] ss:$8 sps:$4 sm:$0xff]   ;;  %v1017_v47 = vld [vmem:[%s1414_s3 + $0x94] ss:$8 sps:$4 sm:$0xff]   ;;  %v1019_v48 = vld [vmem:[%s1414_s3 + $0x90] ss:$8 sps:$4 sm:$0xff]  }
  0x2c   :  { %v1020_v49 = vld [vmem:[%s1414_s3 + $0x84] ss:$8 sps:$4 sm:$0xff]   ;;  %v1022_v50 = vld [vmem:[%s1414_s3 + $0x80] ss:$8 sps:$4 sm:$0xff]   ;;  %v1023_v51 = vld [vmem:[#allocation5 + $0x70] ss:$8 sps:$4 sm:$0xff]  }
  0x2d   :  { %v1025_v52 = vld [vmem:[#allocation5 + $0x74] ss:$8 sps:$4 sm:$0xff]   ;;  %v1028_v53 = vld [vmem:[#allocation5 + $0x64] ss:$8 sps:$4 sm:$0xff]   ;;  %v1026_v54 = vld [vmem:[#allocation5 + $0x60] ss:$8 sps:$4 sm:$0xff]  }
  0x2e   :  { %178 = vmatpush1.bf16.msra.mxu0 %v965_v13  ;;  %425 = vmatpush1.bf16.msra.mxu1 %v986_v22  ;;  %v1031_v55 = vld [vmem:[#allocation5 + $0x54] ss:$8 sps:$4 sm:$0xff]   ;;  %v1029_v56 = vld [vmem:[#allocation5 + $0x50] ss:$8 sps:$4 sm:$0xff]   ;;  %v1034_v57 = vld [vmem:[#allocation5 + $0x44] ss:$8 sps:$4 sm:$0xff]  }
  0x2f   :  { %179 = vmatprep.subr.bf16.mxu0 %v966_v16  ;;  %426 = vmatprep.subr.bf16.mxu1 %v987_v23  ;;  %v1032_v58 = vld [vmem:[#allocation5 + $0x40] ss:$8 sps:$4 sm:$0xff]   ;;  %v1037_v59 = vld [vmem:[#allocation5 + $0x34] ss:$8 sps:$4 sm:$0xff]   ;;  %v1035_v60 = vld [vmem:[#allocation5 + $0x30] ss:$8 sps:$4 sm:$0xff]  }
  0x30   :  { %v1040_v61 = vld [vmem:[#allocation5 + $0x24] ss:$8 sps:$4 sm:$0xff]   ;;  %v1038_v62 = vld [vmem:[#allocation5 + $0x20] ss:$8 sps:$4 sm:$0xff]   ;;  %v1043_v63 = vld [vmem:[#allocation5 + $0x14] ss:$8 sps:$4 sm:$0xff]  }
  0x31   :  { %v1041_v0 = vld [vmem:[#allocation5 + $0x10] ss:$8 sps:$4 sm:$0xff]   ;;  %v1046_v1 = vld [vmem:[#allocation5 + $0x4] ss:$8 sps:$4 sm:$0xff]   ;;  %v1044_v2 = vld [vmem:[#allocation5] ss:$8 sps:$4 sm:$0xff]  }
  0x32   :  { %180 = vmatpush1.bf16.msra.mxu0 %v968_v17  ;;  %427 = vmatpush1.bf16.msra.mxu1 %v989_v27  ;;  %v1049_v3 = vld [vmem:[#allocation5 + $0xf4] ss:$8 sps:$4 sm:$0xff]   ;;  %v1047_v4 = vld [vmem:[#allocation5 + $0xf0] ss:$8 sps:$4 sm:$0xff]   ;;  %v1052_v5 = vld [vmem:[#allocation5 + $0xe4] ss:$8 sps:$4 sm:$0xff]  }
  0x33   :  { %181 = vmatprep.subr.bf16.mxu0 %v969_v20  ;;  %428 = vmatprep.subr.bf16.mxu1 %v990_v28  ;;  %v1050_v6 = vld [vmem:[#allocation5 + $0xe0] ss:$8 sps:$4 sm:$0xff]   ;;  %v1055_v7 = vld [vmem:[#allocation5 + $0xd4] ss:$8 sps:$4 sm:$0xff]   ;;  %v1053_v8 = vld [vmem:[#allocation5 + $0xd0] ss:$8 sps:$4 sm:$0xff]  }
  0x34   :  { %v1058_v9 = vld [vmem:[#allocation5 + $0xc4] ss:$8 sps:$4 sm:$0xff]   ;;  %v1056_v10 = vld [vmem:[#allocation5 + $0xc0] ss:$8 sps:$4 sm:$0xff]   ;;  %v1061_v11 = vld [vmem:[#allocation5 + $0xb4] ss:$8 sps:$4 sm:$0xff]  }
  0x35   :  { %v1059_v12 = vld [vmem:[#allocation5 + $0xb0] ss:$8 sps:$4 sm:$0xff]   ;;  %v1064_v13 = vld [vmem:[#allocation5 + $0xa4] ss:$8 sps:$4 sm:$0xff]   ;;  %v1062_v14 = vld [vmem:[#allocation5 + $0xa0] ss:$8 sps:$4 sm:$0xff]  }
  0x36   :  { %182 = vmatpush1.bf16.msra.mxu0 %v971_v21  ;;  %429 = vmatpush1.bf16.msra.mxu1 %v992_v29  ;;  %v80_v16 = vshrl.u32 %v79_v15, 7  ;;  %v77_v18 = vld [vmem:[%s1413_s2] sm:$0x3]  ;;  %vm812_vm0 = vcmask 64512  }
  0x37   :  { %183 = vmatprep.subr.bf16.mxu0 %v972_v24  ;;  %430 = vmatprep.subr.bf16.mxu1 %v993_v30  ;;  %v726_v15 = vld [vmem:[%s1418_s7 + $0x80] sm:$0xff] }
  0x38   :  { %v1293_v17 = vsub.s32 0, %v80_v16  ;;  %v1298_v19 = vsub.s32 1, %v80_v16  ;;  %v710_v16 = vld [vmem:[%s1418_s7] sm:$0xff] }
  0x3a   :  { %184 = vmatpush1.bf16.msra.mxu0 %v974_v25  ;;  %431 = vmatpush1.bf16.msra.mxu1 %v995_v32  ;;  %v82_v20 = vrot.slane %v77_v18, %v1293_v17  ;;  %v86_v21 = vrot.slane %v77_v18, %v1298_v19  ;;  %v1067_v32 = vld [vmem:[#allocation5 + $0x94] ss:$8 sps:$4 sm:$0xff]   ;;  %v495_v18 = vld [vmem:[%s1417_s6] sm:$0x3] }
  0x3b   :  { %432 = vmatprep.subr.bf16.mxu1 %v996_v33  ;;  %667 = vmatprep.subr.bf16.mxu0 %v1025_v52  ;;  %v1065_v33 = vld [vmem:[#allocation5 + $0x90] ss:$8 sps:$4 sm:$0xff]  }
  0x3c   :  { %v733_v52 = vld [vmem:[%s1418_s7 + $0xb8] sm:$0xff] }
  0x3d   :  { %202 = vmatmul.mubr.bf16.vlgmr.msra.gmra.mxu0 %v60_v31 }
  0x3e   :  { %433 = vmatpush1.bf16.msra.mxu1 %v998_v34  ;;  %668 = vmatpush1.bf16.msra.mxu0 %v1023_v51  ;;  %v1070_v34 = vld [vmem:[#allocation5 + $0x84] ss:$8 sps:$4 sm:$0xff]  }
  0x3f   :  { %434 = vmatprep.subr.bf16.mxu1 %v999_v35  ;;  %669 = vmatprep.subr.bf16.mxu0 %v1028_v53  ;;  %v1068_v35 = vld [vmem:[#allocation5 + $0x80] ss:$8 sps:$4 sm:$0xff]   ;;  %v717_v53 = vld [vmem:[%s1418_s7 + $0x38] sm:$0xff] }
  0x40   :  { %v718_v51 = vld [vmem:[%s1418_s7 + $0x40] sm:$0xff] }
  0x42   :  { %435 = vmatpush2.bf16.msra.mxu1 %v1001_v36  ;;  %670 = vmatpush1.bf16.msra.mxu0 %v1026_v54  ;;  %v741_v36 = vld [vmem:[%s1418_s7 + $0xf8] sm:$0xff]  ;;  %v732_v54 = vld [vmem:[%s1418_s7 + $0xb0] sm:$0xff] }
  0x43   :  { %436 = vmatprep.subr.bf16.mxu1 %v1002_v37  ;;  %671 = vmatprep.subr.bf16.mxu0 %v1031_v55  ;;  %v725_v37 = vld [vmem:[%s1418_s7 + $0x78] sm:$0xff]  ;;  %v716_v55 = vld [vmem:[%s1418_s7 + $0x30] sm:$0xff] }
  0x46   :  { %437 = vmatpush2.bf16.msra.mxu1 %v1004_v38  ;;  %672 = vmatpush1.bf16.msra.mxu0 %v1029_v56  ;;  %v740_v38 = vld [vmem:[%s1418_s7 + $0xf0] sm:$0xff]  ;;  %v731_v56 = vld [vmem:[%s1418_s7 + $0xa8] sm:$0xff] }
  0x47   :  { %438 = vmatprep.subr.bf16.mxu1 %v1005_v39  ;;  %673 = vmatprep.subr.bf16.mxu0 %v1034_v57  ;;  %v724_v39 = vld [vmem:[%s1418_s7 + $0x70] sm:$0xff]  ;;  %v715_v57 = vld [vmem:[%s1418_s7 + $0x28] sm:$0xff] }
  0x4a   :  { %439 = vmatpush2.bf16.msra.mxu1 %v1007_v40  ;;  %674 = vmatpush1.bf16.msra.mxu0 %v1032_v58  ;;  %v739_v40 = vld [vmem:[%s1418_s7 + $0xe8] sm:$0xff]  ;;  %v730_v58 = vld [vmem:[%s1418_s7 + $0xa0] sm:$0xff] }
  0x4b   :  { %440 = vmatprep.subr.bf16.mxu1 %v1008_v41  ;;  %675 = vmatprep.subr.bf16.mxu0 %v1037_v59  ;;  %v723_v41 = vld [vmem:[%s1418_s7 + $0x68] sm:$0xff]  ;;  %v714_v59 = vld [vmem:[%s1418_s7 + $0x20] sm:$0xff] }
  0x4e   :  { %441 = vmatpush2.bf16.msra.mxu1 %v1010_v42  ;;  %676 = vmatpush1.bf16.msra.mxu0 %v1035_v60  ;;  %v738_v42 = vld [vmem:[%s1418_s7 + $0xe0] sm:$0xff] }
  0x4f   :  { %442 = vmatprep.subr.bf16.mxu1 %v1011_v43  ;;  %677 = vmatprep.subr.bf16.mxu0 %v1040_v61  ;;  %v722_v43 = vld [vmem:[%s1418_s7 + $0x60] sm:$0xff] }
  0x50   :  { %v246_v60 = vld [vmem:[%s1415_s4] sm:$0x3] }
  0x51   :  { %v251_v61 = vrot.slane %v246_v60, %v1293_v17 }
  0x52   :  { %443 = vmatpush2.bf16.msra.mxu1 %v1013_v44  ;;  %678 = vmatpush1.bf16.msra.mxu0 %v1038_v62  ;;  %v737_v44 = vld [vmem:[%s1418_s7 + $0xd8] sm:$0xff]  ;;  %v255_v62 = vrot.slane %v246_v60, %v1298_v19 }
  0x53   :  { %444 = vmatprep.subr.bf16.mxu1 %v1014_v45  ;;  %679 = vmatprep.subr.bf16.mxu0 %v1043_v63  ;;  %v721_v45 = vld [vmem:[%s1418_s7 + $0x58] sm:$0xff] }
  0x56   :  { %445 = vmatpush2.bf16.msra.mxu1 %v1016_v46  ;;  %680 = vmatpush1.bf16.msra.mxu0 %v1041_v0  ;;  %v736_v46 = vld [vmem:[%s1418_s7 + $0xd0] sm:$0xff] }
  0x57   :  { %446 = vmatprep.subr.bf16.mxu1 %v1017_v47  ;;  %681 = vmatprep.subr.bf16.mxu0 %v1046_v1  ;;  %v720_v47 = vld [vmem:[%s1418_s7 + $0x50] sm:$0xff] }
  0x5a   :  { %447 = vmatpush2.bf16.msra.mxu1 %v1019_v48  ;;  %682 = vmatpush1.bf16.msra.mxu0 %v1044_v2  ;;  %v735_v48 = vld [vmem:[%s1418_s7 + $0xc8] sm:$0xff] }
  0x5b   :  { %448 = vmatprep.subr.bf16.mxu1 %v1020_v49  ;;  %683 = vmatprep.subr.bf16.mxu0 %v1049_v3  ;;  %v719_v49 = vld [vmem:[%s1418_s7 + $0x48] sm:$0xff] }
  0x5e   :  { %449 = vmatpush2.bf16.msra.mxu1 %v1022_v50  ;;  %684 = vmatpush2.bf16.msra.mxu0 %v1047_v4  ;;  %v734_v50 = vld [vmem:[%s1418_s7 + $0xc0] sm:$0xff] }
  0x5f   :  { %685 = vmatprep.subr.bf16.mxu0 %v1052_v5  ;;  %910 = vmatprep.subr.mxu1 %v741_v36 }
  0x62   :  { %686 = vmatpush2.bf16.msra.mxu0 %v1050_v6 }
  0x63   :  { %687 = vmatprep.subr.bf16.mxu0 %v1055_v7 }
  0x66   :  { %688 = vmatpush2.bf16.msra.mxu0 %v1053_v8 }
  0x67   :  { %689 = vmatprep.subr.bf16.mxu0 %v1058_v9  ;;  %v729_v9 = vld [vmem:[%s1418_s7 + $0x98] sm:$0xff] }
  0x6a   :  { %690 = vmatpush2.bf16.msra.mxu0 %v1056_v10  ;;  %v713_v10 = vld [vmem:[%s1418_s7 + $0x18] sm:$0xff] }
  0x6b   :  { %691 = vmatprep.subr.bf16.mxu0 %v1061_v11  ;;  %v728_v11 = vld [vmem:[%s1418_s7 + $0x90] sm:$0xff] }
  0x6e   :  { %692 = vmatpush2.bf16.msra.mxu0 %v1059_v12  ;;  %v712_v12 = vld [vmem:[%s1418_s7 + $0x10] sm:$0xff] }
  0x6f   :  { %693 = vmatprep.subr.bf16.mxu0 %v1064_v13  ;;  %v727_v13 = vld [vmem:[%s1418_s7 + $0x88] sm:$0xff] }
  0x72   :  { %694 = vmatpush2.bf16.msra.mxu0 %v1062_v14  ;;  %v711_v14 = vld [vmem:[%s1418_s7 + $0x8] sm:$0xff]  ;;  %s1142_s7 = smov [#allocation7]  }
  0x73   :  { %695 = vmatprep.subr.bf16.mxu0 %v1067_v32  ;;  %s820_s19 = sshll.u32 %s1142_s7, 4  ;;  %s821_s19 = int_to_ptr.vmem [resolvable:$true] %s820_s19 }
  0x74   :  { %s1111_s6 = scalar_lea.vmem %s821_s19, 128  ;;  %p1116_p11 = scmp.lt.s32.totalorder %s821_s19, %s821_s19 }
  0x75   :  { %p1112_p10 = scmp.ne.s32.totalorder %s821_s19, %s1111_s6  ;;  %p1117_p12 = scmp.lt.s32.totalorder %s1111_s6, %s1111_s6 }
  0x76   :  { %696 = vmatpush2.bf16.msra.mxu0 %v1065_v33 }
  0x77   :  { %697 = vmatprep.subr.bf16.mxu0 %v1070_v34  ;;  %p1118_p13 = por %p1117_p12, %p1116_p11 }
  0x79   :  { %p1119_p0 = pnand %p1118_p13, %p1112_p10 }
  0x7a   :  { %698 = vmatpush2.bf16.msra.mxu0 %v1068_v35 }
  0xfd   :  { %v203_v22 = vpop.f32.mrf.mxu0 }
  0xfe   :  { %v204_v23 = vadd.f32 %v203_v22, %v82_v20  ;;  %v500_v20 = vrot.slane %v495_v18, %v1293_v17 }
  0xff   :  { %v205_v24 = vpop.f32.mrf.mxu0 }
 0x100   :  { %v206_v25 = vadd.f32 %v205_v24, %v86_v21  ;;  %v210_v26 = vmax.f32 %v204_v23, 0.0  ;;  %v504_v21 = vrot.slane %v495_v18, %v1298_v19 }
 0x101   :  { %v207_v27 = vpop.f32.mrf.mxu0 }
 0x102   :  { %v211_v28 = vmax.f32 %v206_v25, 0.0  ;;  %v212_v31 = vpack.c.bf16 %v210_v26, %v210_v26 }
 0x103   :  { %v208_v29 = vpop.f32.mrf.mxu0 }
 0x104   :  { %v213_v30 = vpack.c.bf16 %v211_v28, %v211_v28 }
 0x106   :  { %450 = vmatprep.mubr.bf16.mxu1 %v213_v30 }
 0x107   :  { %451 = vmatmul.mubr.bf16.vlgmr.msra.gmra.mxu1 %v212_v31 }
 0x108   :  { %911 = vmatpush3.msra.mxu1 %v725_v37 }
 0x109   :  { %912 = vmatprep.subr.mxu1 %v740_v38 }
 0x10a   :  { %913 = vmatpush3.msra.mxu1 %v724_v39 }
 0x10b   :  { %914 = vmatprep.subr.mxu1 %v739_v40 }
 0x10c   :  { %915 = vmatpush3.msra.mxu1 %v723_v41 }
 0x10d   :  { %916 = vmatprep.subr.mxu1 %v738_v42 }
 0x10e   :  { %917 = vmatpush3.msra.mxu1 %v722_v43 }
 0x10f   :  { %918 = vmatprep.subr.mxu1 %v737_v44 }
 0x110   :  { %919 = vmatpush3.msra.mxu1 %v721_v45 }
 0x111   :  { %920 = vmatprep.subr.mxu1 %v736_v46 }
 0x112   :  { %921 = vmatpush3.msra.mxu1 %v720_v47 }
 0x113   :  { %922 = vmatprep.subr.mxu1 %v735_v48 }
 0x114   :  { %923 = vmatpush3.msra.mxu1 %v719_v49 }
 0x115   :  { %924 = vmatprep.subr.mxu1 %v734_v50 }
 0x116   :  { %925 = vmatpush3.msra.mxu1 %v718_v51 }
 0x117   :  { %926 = vmatprep.subr.mxu1 %v733_v52 }
 0x118   :  { %927 = vmatpush3.msra.mxu1 %v717_v53 }
 0x119   :  { %928 = vmatprep.subr.mxu1 %v732_v54 }
 0x11a   :  { %929 = vmatpush3.msra.mxu1 %v716_v55 }
 0x11b   :  { %930 = vmatprep.subr.mxu1 %v731_v56 }
 0x11c   :  { %931 = vmatpush3.msra.mxu1 %v715_v57 }
 0x11d   :  { %932 = vmatprep.subr.mxu1 %v730_v58 }
 0x11e   :  { %933 = vmatpush3.msra.mxu1 %v714_v59 }
 0x11f   :  { %934 = vmatprep.subr.mxu1 %v729_v9 }
 0x120   :  { %935 = vmatpush3.msra.mxu1 %v713_v10 }
 0x121   :  { %936 = vmatprep.subr.mxu1 %v728_v11 }
 0x122   :  { %937 = vmatpush3.msra.mxu1 %v712_v12 }
 0x123   :  { %938 = vmatprep.subr.mxu1 %v727_v13 }
 0x124   :  { %939 = vmatpush3.msra.mxu1 %v711_v14 }
 0x125   :  { %940 = vmatprep.subr.mxu1 %v726_v15 }
 0x126   :  { %941 = vmatpush3.msra.mxu1 %v710_v16 }
 0x1c7   :  { %v452_v63 = vpop.f32.mrf.mxu1 }
 0x1c8   :  { %v453_v0 = vadd.f32 %v452_v63, %v251_v61 }
 0x1c9   :  { %v454_v1 = vpop.f32.mrf.mxu1 }
 0x1ca   :  { %v455_v2 = vadd.f32 %v454_v1, %v255_v62  ;;  %v459_v3 = vmax.f32 %v453_v0, 0.0 }
 0x1cb   :  { %v456_v4 = vpop.f32.mrf.mxu1 }
 0x1cc   :  { %v460_v5 = vmax.f32 %v455_v2, 0.0  ;;  %v461_v8 = vpack.c.bf16 %v459_v3, %v459_v3 }
 0x1cd   :  { %v457_v6 = vpop.f32.mrf.mxu1 }
 0x1ce   :  { %v462_v7 = vpack.c.bf16 %v460_v5, %v460_v5 }
 0x1d0   :  { %699 = vmatprep.mubr.bf16.mxu0 %v462_v7 }
 0x1d1   :  { %700 = vmatmul.mubr.bf16.vlgmr.msra.gmra.mxu0 %v461_v8 }
 0x291   :  { %v701_v22 = vpop.f32.mrf.mxu0 }
 0x292   :  { %v702_v23 = vadd.f32 %v701_v22, %v500_v20 }
 0x293   :  { %v703_v24 = vpop.f32.mrf.mxu0 }
 0x294   :  { %v704_v25 = vadd.f32 %v703_v24, %v504_v21  ;;  %v708_v28 = vmul.f32 %v702_v23, %v702_v23 }
 0x295   :  { %v705_v26 = vpop.f32.mrf.mxu0 }
 0x296   :  { %v709_v27 = vmul.f32 %v704_v25, %v704_v25 }
 0x297   :  { %v706_v29 = vpop.f32.mrf.mxu0 }
 0x298   :  { %806 = vmatprep.mubr.f32.mxu1 %v709_v27 }
 0x299   :  { %807 = vmatmul.mubr.f32.vlgmr.msra.gmra.mxu1 %v708_v28 }
 0x359   :  { %v942_v30 = vpop.f32.mrf.mxu1 }
 0x35b   :  { %v943_v31 = vpop.f32.mrf.mxu1 }
 0x35c   :  { %v944_v32 = vadd.f32 %v943_v31, %v942_v30 }
 0x35e   :  { %813 = vst.msk [vmem:[#allocation7] sm:$0xff] %vm812_vm0, %v944_v32 }
 0x35f   :  { %1122 = shalt.err (!%p1119_p0)
}
 0x360   :  { %823 = dma.vmem_to_hbm [thread:$0]  %s821_s19, 128, %s1419_s8, [#allocation4]  }
 0x361   :  { %1135 = dma.done.wait [#allocation4], 128  }
 0x362   :  { %1136 = vsyncadd [#allocation4], 4294967168 }
 0x363   :  { %827 = vsyncpa [#allocation3], 1 }
 0x364   :  { %828 = vsyncpa [#allocation6], 1 }
 0x365   :  { %829 = vsyncpa [#allocation4], 1 }

</bundles_post_ra>
